<compile_context>
chip_gen: v5e
topology: v5e:2x2
jax: 0.10.0
libtpu: 0.0.40
codegen_flags: <defaults>
</compile_context>

<pallas_src>
import jax
import jax.numpy as jnp
from jax import lax
from jax.experimental import pallas as pl
from jax.experimental.pallas import tpu as pltpu


def _kp_align_kernel(feat_ref, ind_ref, mask_ref, num_ref, den_ref, acc_ref):
    h = pl.program_id(1)
    n_h = pl.num_programs(1)

    @pl.when(h == 0)
    def _():
        acc_ref[...] = jnp.zeros_like(acc_ref)

    feat = feat_ref[0]            # (16, THW) f32 : hps channels 0..15, HW chunk h
    idx = ind_ref[0]              # (Kp, 1) int32 : gather indices, K on sublanes
    Kp = idx.shape[0]
    THW = feat.shape[1]

    # One-hot over this HW chunk only: onehot[k, j] = (h*THW + j == ind[k]).
    hw = lax.broadcasted_iota(jnp.int32, (Kp, THW), 1) + h * THW
    onehot = (hw == idx).astype(jnp.float32)                    # (Kp, THW)

    # Exact gather on the MXU: acc[c, k] += sum_j feat[c, j] * onehot[k, j].
    acc_ref[...] += lax.dot_general(
        feat, onehot, (((1,), (1,)), ((), ())),
        preferred_element_type=jnp.float32)                     # (16, Kp)

    @pl.when(h == n_h - 1)
    def _():
        kps = acc_ref[...]                                      # (16, Kp)
        m = mask_ref[0]                                         # (8, Kp), odd rows zero
        diff = kps[8:16, :] - kps[0:8, :]                       # x_up - x_bottom per row
        num_ref[...] = jnp.sum(jnp.abs(diff) * m).reshape(1, 1, 1)
        den_ref[...] = jnp.sum(m).reshape(1, 1, 1)


def _pick_hw_chunk(hw):
    """Largest divisor of HW that is a multiple of 128 (<= 2048); else single chunk."""
    if hw % 128 == 0:
        for t in (2048, 1024, 512, 256, 128):
            if hw % t == 0:
                return t
    return hw


@jax.jit
def kp_align_loss(hps, ind, inv_mask):
    """hps: (B, C, H, W) f32 with C >= 16; ind: (B, K) int; inv_mask: (B, K, C')."""
    B, C, H, W = hps.shape
    K = ind.shape[1]
    HW = H * W
    assert C >= 16, "kp_align indexes hps channels 0..15"

    Kp = pl.cdiv(K, 8) * 8              # K on sublanes: pad to a multiple of 8 only
    THW = _pick_hw_chunk(HW)
    n_h = HW // THW

    # Free reshape (no transpose, no HBM copy): channel-major (B, C, HW).
    feat = hps.reshape(B, C, HW).astype(jnp.float32)
    # Indices as (B, Kp, 1): k on sublanes. Padded columns are masked out below.
    ind_p = jnp.pad(ind.astype(jnp.int32), ((0, 0), (0, Kp - K))).reshape(B, Kp, 1)
    # Pair mask precomputed host-side: pairs (0,8),(2,10),(4,12),(6,14) on even rows.
    inv = inv_mask.astype(jnp.float32)
    pair = inv[:, :, 0:8:2] * inv[:, :, 8:16:2]                 # (B, K, 4)
    mask8 = jnp.zeros((B, 8, Kp), jnp.float32)
    mask8 = mask8.at[:, 0:8:2, :K].set(jnp.transpose(pair, (0, 2, 1)))

    grid_spec = pltpu.PrefetchScalarGridSpec(
        num_scalar_prefetch=0,
        grid=(B, n_h),                                          # HW chunks last (reduction)
        in_specs=[
            pl.BlockSpec((1, 16, THW), lambda b, h: (b, 0, h)),  # hps channels 0..15, chunk h
            pl.BlockSpec((1, Kp, 1), lambda b, h: (b, 0, 0)),    # ind (resident across h)
            pl.BlockSpec((1, 8, Kp), lambda b, h: (b, 0, 0)),    # pair mask (resident)
        ],
        out_specs=[
            pl.BlockSpec((1, 1, 1), lambda b, h: (b, 0, 0)),     # numerator per batch
            pl.BlockSpec((1, 1, 1), lambda b, h: (b, 0, 0)),     # denominator per batch
        ],
        scratch_shapes=[pltpu.VMEM((16, Kp), jnp.float32)],      # gathered kps accumulator
    )

    num, den = pl.pallas_call(
        _kp_align_kernel,
        grid_spec=grid_spec,
        out_shape=(
            jax.ShapeDtypeStruct((B, 1, 1), jnp.float32),
            jax.ShapeDtypeStruct((B, 1, 1), jnp.float32),
        ),
        # Batch axis parallel (megacore splits batches on v7x when B >= 2),
        # HW-chunk axis is the reduction -> arbitrary.
        compiler_params=pltpu.CompilerParams(
            dimension_semantics=("parallel", "arbitrary")),
    )(feat, ind_p, mask8)

    return jnp.sum(num) / (jnp.sum(den) + 1e-4)


def kp_align_loss_ref(hps, ind, inv_mask):
    """Plain-JAX reference mirroring the PyTorch module."""
    B, C, H, W = hps.shape
    K = ind.shape[1]
    feat = jnp.transpose(hps, (0, 2, 3, 1)).reshape(B, H * W, C)
    kps = jnp.take_along_axis(
        feat, jnp.broadcast_to(ind[:, :, None].astype(jnp.int32), (B, K, C)), axis=1)
    index_x = jnp.array([0, 2, 4, 6, 8, 10, 12, 14], dtype=jnp.int32)
    x_bottom = kps[:, :, index_x[0:4]]
    bottom_mask = inv_mask[:, :, index_x[0:4]].astype(jnp.float32)
    x_up = kps[:, :, index_x[4:8]]
    up_mask = inv_mask[:, :, index_x[4:8]].astype(jnp.float32)
    m = bottom_mask * up_mask
    loss = jnp.sum(jnp.abs(x_up * m - x_bottom * m))
    return loss / (m.sum() + 1e-4)


if __name__ == "__main__":
    def run_case(B, C, H, W, K, seed):
        key = jax.random.PRNGKey(seed)
        k0, k1, k2 = jax.random.split(key, 3)
        hps = jax.random.normal(k0, (B, C, H, W), dtype=jnp.float32)
        ind = jax.random.randint(k1, (B, K), 0, H * W, dtype=jnp.int32)
        inv_mask = (jax.random.uniform(k2, (B, K, C)) > 0.3).astype(jnp.float32)

        loss = jax.block_until_ready(kp_align_loss(hps, ind, inv_mask))
        ref = kp_align_loss_ref(hps, ind, inv_mask)
        assert jnp.abs(loss - ref) < 1e-4 * (1.0 + jnp.abs(ref)), (loss, ref)

    # Case 1: HW = 4096 -> chunked gather (THW = 2048, 2 chunks per batch).
    run_case(B=2, C=34, H=64, W=64, K=8, seed=0)
    # Case 2: HW = 252 (not a multiple of 128) -> single full-dim chunk; K padded 5->8.
    run_case(B=2, C=34, H=18, W=14, K=5, seed=0)

    print("KERNEL_OK")
</pallas_src>

<mosaic_0001>
module attributes {stable_mosaic.version = 11 : i64} {
  func.func @_kp_align_kernel(%arg0: i32, %arg1: i32, %arg2: memref<1x16x2048xf32, #tpu.memory_space<vmem>>, %arg3: memref<1x8x1xi32, #tpu.memory_space<vmem>>, %arg4: memref<1x8x8xf32, #tpu.memory_space<vmem>>, %arg5: memref<1x1x1xf32, #tpu.memory_space<vmem>>, %arg6: memref<1x1x1xf32, #tpu.memory_space<vmem>>, %arg7: memref<16x8xf32, #tpu.memory_space<vmem>>) attributes {dimension_semantics = [#tpu.dimension_semantics<parallel>, #tpu.dimension_semantics<arbitrary>], iteration_bounds = array<i64: 2, 2>, scalar_prefetch = 0 : i64, scratch_operands = 1 : i64, tpu.core_type = #tpu.core_type<tc>, window_params = [{transform_indices = @transform_0, window_bounds = array<i64: 1, 16, 2048>}, {transform_indices = @transform_1, window_bounds = array<i64: 1, 8, 1>}, {transform_indices = @transform_2, window_bounds = array<i64: 1, 8, 8>}, {transform_indices = @transform_3, window_bounds = array<i64: 1, 1, 1>}, {transform_indices = @transform_4, window_bounds = array<i64: 1, 1, 1>}]} {
    %c0_i32 = arith.constant 0 : i32
    %0 = arith.cmpi eq, %arg1, %c0_i32 : i32
    %1 = arith.extui %0 : i1 to i32
    %c0_i32_0 = arith.constant 0 : i32
    %2 = arith.cmpi ne, %1, %c0_i32_0 : i32
    scf.if %2 {
      %cst_11 = arith.constant 0.000000e+00 : f32
      %22 = vector.broadcast %cst_11 : f32 to vector<16x8xf32>
      %c0_12 = arith.constant 0 : index
      %c0_13 = arith.constant 0 : index
      %23 = vector.load %arg7[%c0_12, %c0_13] : memref<16x8xf32, #tpu.memory_space<vmem>>, vector<16x8xf32>
      tpu.vector_store %arg7[%c0_12, %c0_13], %22 {strides = array<i32>} : memref<16x8xf32, #tpu.memory_space<vmem>>, vector<16x8xf32>,
    } else {
    }
    %c0 = arith.constant 0 : index
    %c0_1 = arith.constant 0 : index
    %c0_2 = arith.constant 0 : index
    %3 = vector.load %arg2[%c0, %c0_1, %c0_2] : memref<1x16x2048xf32, #tpu.memory_space<vmem>>, vector<1x16x2048xf32>
    %4 = vector.shape_cast %3 : vector<1x16x2048xf32> to vector<16x2048xf32>
    %c0_3 = arith.constant 0 : index
    %c0_4 = arith.constant 0 : index
    %c0_5 = arith.constant 0 : index
    %5 = vector.load %arg3[%c0_3, %c0_4, %c0_5] : memref<1x8x1xi32, #tpu.memory_space<vmem>>, vector<1x8x1xi32>
    %6 = vector.shape_cast %5 : vector<1x8x1xi32> to vector<8x1xi32>
    %7 = tpu.iota {dimensions = array<i32: 1>} : vector<8x2048xi32>
    %c2048_i32 = arith.constant 2048 : i32
    %8 = arith.muli %arg1, %c2048_i32 : i32
    %9 = vector.broadcast %8 : i32 to vector<8x2048xi32>
    %10 = arith.addi %7, %9 : vector<8x2048xi32>
    %11 = vector.broadcast %6 : vector<8x1xi32> to vector<8x2048xi32>
    %12 = arith.cmpi eq, %10, %11 : vector<8x2048xi32>
    %13 = arith.extui %12 : vector<8x2048xi1> to vector<8x2048xi32>
    %14 = arith.sitofp %13 : vector<8x2048xi32> to vector<8x2048xf32>
    %c0_6 = arith.constant 0 : index
    %c0_7 = arith.constant 0 : index
    %15 = vector.load %arg7[%c0_6, %c0_7] : memref<16x8xf32, #tpu.memory_space<vmem>>, vector<16x8xf32>
    %cst = arith.constant dense<0.000000e+00> : vector<16x8xf32>
    %16 = tpu.matmul %4, %14, %cst {dimension_numbers = #tpu.dot_dimension_numbers<[1], [1], [0], [0], [0, 0, 1, 0], [], []>} : vector<16x2048xf32>, vector<8x2048xf32>, vector<16x8xf32> -> vector<16x8xf32>
    %17 = arith.addf %15, %16 : vector<16x8xf32>
    %c0_8 = arith.constant 0 : index
    %c0_9 = arith.constant 0 : index
    %18 = vector.load %arg7[%c0_8, %c0_9] : memref<16x8xf32, #tpu.memory_space<vmem>>, vector<16x8xf32>
    tpu.vector_store %arg7[%c0_8, %c0_9], %17 {strides = array<i32>} : memref<16x8xf32, #tpu.memory_space<vmem>>, vector<16x8xf32>,
    %c1_i32 = arith.constant 1 : i32
    %19 = arith.cmpi eq, %arg1, %c1_i32 : i32
    %20 = arith.extui %19 : i1 to i32
    %c0_i32_10 = arith.constant 0 : i32
    %21 = arith.cmpi ne, %20, %c0_i32_10 : i32
    scf.if %21 {
      %c0_11 = arith.constant 0 : index
      %c0_12 = arith.constant 0 : index
      %22 = vector.load %arg7[%c0_11, %c0_12] : memref<16x8xf32, #tpu.memory_space<vmem>>, vector<16x8xf32>
      %c0_13 = arith.constant 0 : index
      %c0_14 = arith.constant 0 : index
      %c0_15 = arith.constant 0 : index
      %23 = vector.load %arg4[%c0_13, %c0_14, %c0_15] : memref<1x8x8xf32, #tpu.memory_space<vmem>>, vector<1x8x8xf32>
      %24 = vector.shape_cast %23 : vector<1x8x8xf32> to vector<8x8xf32>
      %25 = vector.extract_strided_slice %22 {offsets = [8, 0], sizes = [8, 8], strides = [1, 1]} : vector<16x8xf32> to vector<8x8xf32>
      %26 = vector.extract_strided_slice %22 {offsets = [0, 0], sizes = [8, 8], strides = [1, 1]} : vector<16x8xf32> to vector<8x8xf32>
      %27 = arith.subf %25, %26 : vector<8x8xf32>
      %28 = math.absf %27 : vector<8x8xf32>
      %29 = arith.mulf %28, %24 : vector<8x8xf32>
      %30 = vector.shape_cast %29 : vector<8x8xf32> to vector<1x8x8xf32>
      %cst_16 = arith.constant dense<0.000000e+00> : vector<1xf32>
      %31 = vector.multi_reduction <add>, %30, %cst_16 [1, 2] : vector<1x8x8xf32> to vector<1xf32>
      %32 = vector.shape_cast %31 : vector<1xf32> to vector<1x1x1xf32>
      %33 = vector.extract %32[0, 0, 0] : f32 from vector<1x1x1xf32>
      %34 = vector.broadcast %33 : f32 to vector<1x1x1xf32>
      %c0_17 = arith.constant 0 : index
      %c0_18 = arith.constant 0 : index
      %c0_19 = arith.constant 0 : index
      %35 = vector.load %arg5[%c0_17, %c0_18, %c0_19] : memref<1x1x1xf32, #tpu.memory_space<vmem>>, vector<1x1x1xf32>
      tpu.vector_store %arg5[%c0_17, %c0_18, %c0_19], %34 {strides = array<i32>} : memref<1x1x1xf32, #tpu.memory_space<vmem>>, vector<1x1x1xf32>,
      %36 = vector.shape_cast %24 : vector<8x8xf32> to vector<1x8x8xf32>
      %cst_20 = arith.constant dense<0.000000e+00> : vector<1xf32>
      %37 = vector.multi_reduction <add>, %36, %cst_20 [1, 2] : vector<1x8x8xf32> to vector<1xf32>
      %38 = vector.shape_cast %37 : vector<1xf32> to vector<1x1x1xf32>
      %39 = vector.extract %38[0, 0, 0] : f32 from vector<1x1x1xf32>
      %40 = vector.broadcast %39 : f32 to vector<1x1x1xf32>
      %c0_21 = arith.constant 0 : index
      %c0_22 = arith.constant 0 : index
      %c0_23 = arith.constant 0 : index
      %41 = vector.load %arg6[%c0_21, %c0_22, %c0_23] : memref<1x1x1xf32, #tpu.memory_space<vmem>>, vector<1x1x1xf32>
      tpu.vector_store %arg6[%c0_21, %c0_22, %c0_23], %40 {strides = array<i32>} : memref<1x1x1xf32, #tpu.memory_space<vmem>>, vector<1x1x1xf32>,
    } else {
    }
    return
  }
  func.func @transform_0(%arg0: i32, %arg1: i32) -> (i32, i32, i32) {
    %c0_i32 = arith.constant 0 : i32
    %c0_i32_0 = arith.constant 0 : i32
    return %arg0, %c0_i32, %arg1 : i32, i32, i32
  }
  func.func @transform_1(%arg0: i32, %arg1: i32) -> (i32, i32, i32) {
    %c0_i32 = arith.constant 0 : i32
    %c0_i32_0 = arith.constant 0 : i32
    %c0_i32_1 = arith.constant 0 : i32
    return %arg0, %c0_i32, %c0_i32_0 : i32, i32, i32
  }
  func.func @transform_2(%arg0: i32, %arg1: i32) -> (i32, i32, i32) {
    %c0_i32 = arith.constant 0 : i32
    %c0_i32_0 = arith.constant 0 : i32
    %c0_i32_1 = arith.constant 0 : i32
    return %arg0, %c0_i32, %c0_i32_0 : i32, i32, i32
  }
  func.func @transform_3(%arg0: i32, %arg1: i32) -> (i32, i32, i32) {
    %c0_i32 = arith.constant 0 : i32
    %c0_i32_0 = arith.constant 0 : i32
    %c0_i32_1 = arith.constant 0 : i32
    return %arg0, %c0_i32, %c0_i32_0 : i32, i32, i32
  }
  func.func @transform_4(%arg0: i32, %arg1: i32) -> (i32, i32, i32) {
    %c0_i32 = arith.constant 0 : i32
    %c0_i32_0 = arith.constant 0 : i32
    %c0_i32_1 = arith.constant 0 : i32
    return %arg0, %c0_i32, %c0_i32_0 : i32, i32, i32
  }
}

</mosaic_0001>

<bundles_post_ra>
// kernel: kp_align_loss.1
= control target key start
LH: loop header
LB: loop body
LE: loop exit
PB: predicated region body
PF: predicated region fallthrough
CT: control target
= control target key end

     0   :  { %s1185_s15 = smov 0   ;;  %s1187_s16 = smov 0   ;;  %s1480_s0 = inlined_call_operand.vmem [shape: f32[2,34,4096], index: 0, kind: input, shape index: {}]   ;;  %s1481_s1 = inlined_call_operand.vmem [shape: s32[2,8,1], index: 1, kind: input, shape index: {}]   ;;  %s1482_s2 = inlined_call_operand.vmem [shape: f32[2,8,8], index: 2, kind: input, shape index: {}]   ;;  %s1483_s3 = inlined_call_operand.vmem [shape: f32[2,1,1], index: 3, kind: output, shape index: {0}]   ;;  %s1484_s4 = inlined_call_operand.vmem [shape: f32[2,1,1], index: 4, kind: output, shape index: {1}]  }
   0x1   :  { %s1189_s17 = smov 0   ;;  %s1191_s18 = smov 0  }
   0x2   :  { %s1193_s19 = smov 0   ;;  %s1195_s20 = smov 0  }
   0x3   :  { %s1197_s21 = smov 0  }
   0x4 LB: > { %s24_s22 = sadd.s32 1, %s1147_s19  ;;  %s27_s23 = sadd.s32 1, %s1151_s20  ;;  %s1155_s21 = sphi %s1197_s21, %s15_s21   ;;  %s1151_s20 = sphi %s1195_s20, %s1490_s20   ;;  %s1147_s19 = sphi %s1193_s19, %s1489_s19   ;;  %s1143_s18 = sphi %s1191_s18, %s1488_s18   ;;  %s1139_s17 = sphi %s1189_s17, %s1487_s17   ;;  %s1135_s16 = sphi %s1187_s16, %s1486_s16   ;;  %s1131_s15 = sphi %s1185_s15, %s1485_s15  }
   0x5   : > { %p25_p0 = scmp.ge.s32.totalorder %s24_s22, 2  ;;  %p43_p1 = scmp.ne.s32.totalorder %s1135_s16, %s1131_s15 }
   0x6   : > { %p44_p2 = scmp.eq.s32.totalorder %s1155_s21, 0  ;;  %s36_s27 = sadd.s32 1, %s1135_s16 }
   0x7   : > { %s1492_s22 = smov (%p25_p0, %s24_s22), 0  ;;  %s1494_s23 = smov (!%p25_p0, %s27_s23), %s1151_s20 }
   0x8   : > { %p45_p3 = por %p44_p2, %p43_p1  ;;  %p29_p4 = scmp.ge.s32.totalorder %s1494_s23, 2 }
   0x9   : > { %s32_s24 = ssub.s32 %s1147_s19, %s1492_s22  ;;  %p991_p6 = scmp.ge.s32.totalorder %s1155_s21, 4 }
   0xa   : > { %s1496_s23 = smov (%p29_p4, %s1494_s23), 0 }
   0xb   : > { %s31_s25 = ssub.s32 %s1151_s20, %s1496_s23  ;;  %173 = sbr.rel (%p991_p6) target bundleno = 56 (0x38), region = 16 }
   0xc   : > { %s33_s26 = sor.u32 %s32_s24, %s31_s25 }
   0xd   : > { %p34_p5 = scmp.eq.s32.totalorder %s33_s26, 0 }
   0xf   : > { %s1236_s28 = scalar_select %p34_p5, %s1135_s16, %s36_s27  }
  0x10   : > { %176 = sbr.rel (!%p45_p3) target bundleno = 56 (0x38), region = 20  ;;  %s178_s29 = sand.u32 (%p45_p3), 1, %s1135_s16  }
  0x11   : > { %s993_s30 = sshll.u32 (%p45_p3), %s1147_s19, 4  ;;  %s992_s5 = sshll.u32 (%p45_p3), %s178_s29, 8 }
  0x12   : > { %s1036_s6 = smul.u32 (%p45_p3), 160, %s1151_s20  ;;  %s1250_s12 = scalar_lea.vmem (%p45_p3), [#allocation3], %s992_s5 }
  0x14   : > { %s183_s7 = sadd.s32 (%p45_p3), %s1036_s6, %s993_s30 }
  0x15   : > { %s994_s8 = sshll.u32 %s183_s7, 3 }
  0x16   : > { %s1245_s11 = scalar_lea.vmem %s1480_s0, %s994_s8 }
  0x17   : > { %v198_v0 = vld [vmem:[%s1245_s11] sm:$0xff]  ;;  %v200_v1 = vld [vmem:[%s1245_s11 + $0x8] sm:$0xff]  ;;  %v202_v2 = vld [vmem:[%s1245_s11 + $0x10] sm:$0xff] }
  0x18   : > { %199 = vst [vmem:[%s1250_s12] sm:$0xff] %v198_v0  ;;  %v204_v3 = vld [vmem:[%s1245_s11 + $0x18] sm:$0xff]  ;;  %v206_v4 = vld [vmem:[%s1245_s11 + $0x20] sm:$0xff]  ;;  %v208_v5 = vld [vmem:[%s1245_s11 + $0x28] sm:$0xff] }
  0x19   : > { %201 = vst [vmem:[%s1250_s12 + $0x8] sm:$0xff] %v200_v1  ;;  %v210_v6 = vld [vmem:[%s1245_s11 + $0x30] sm:$0xff]  ;;  %v212_v7 = vld [vmem:[%s1245_s11 + $0x38] sm:$0xff]  ;;  %v214_v8 = vld [vmem:[%s1245_s11 + $0x40] sm:$0xff] }
  0x1a   : > { %203 = vst [vmem:[%s1250_s12 + $0x10] sm:$0xff] %v202_v2  ;;  %v216_v9 = vld [vmem:[%s1245_s11 + $0x48] sm:$0xff]  ;;  %v218_v10 = vld [vmem:[%s1245_s11 + $0x50] sm:$0xff]  ;;  %v220_v11 = vld [vmem:[%s1245_s11 + $0x58] sm:$0xff] }
  0x1b   : > { %205 = vst [vmem:[%s1250_s12 + $0x18] sm:$0xff] %v204_v3  ;;  %v222_v12 = vld [vmem:[%s1245_s11 + $0x60] sm:$0xff]  ;;  %v224_v13 = vld [vmem:[%s1245_s11 + $0x68] sm:$0xff]  ;;  %v226_v14 = vld [vmem:[%s1245_s11 + $0x70] sm:$0xff] }
  0x1c   : > { %207 = vst [vmem:[%s1250_s12 + $0x20] sm:$0xff] %v206_v4  ;;  %v228_v15 = vld [vmem:[%s1245_s11 + $0x78] sm:$0xff]  ;;  %v230_v16 = vld [vmem:[%s1245_s11 + $0x100] sm:$0xff]  ;;  %v232_v17 = vld [vmem:[%s1245_s11 + $0x108] sm:$0xff] }
  0x1d   : > { %209 = vst [vmem:[%s1250_s12 + $0x28] sm:$0xff] %v208_v5  ;;  %v234_v18 = vld [vmem:[%s1245_s11 + $0x110] sm:$0xff]  ;;  %v236_v19 = vld [vmem:[%s1245_s11 + $0x118] sm:$0xff]  ;;  %v238_v20 = vld [vmem:[%s1245_s11 + $0x120] sm:$0xff] }
  0x1e   : > { %211 = vst [vmem:[%s1250_s12 + $0x30] sm:$0xff] %v210_v6  ;;  %v240_v21 = vld [vmem:[%s1245_s11 + $0x128] sm:$0xff]  ;;  %v242_v22 = vld [vmem:[%s1245_s11 + $0x130] sm:$0xff]  ;;  %v244_v23 = vld [vmem:[%s1245_s11 + $0x138] sm:$0xff] }
  0x1f   : > { %213 = vst [vmem:[%s1250_s12 + $0x38] sm:$0xff] %v212_v7  ;;  %v246_v24 = vld [vmem:[%s1245_s11 + $0x140] sm:$0xff]  ;;  %v248_v25 = vld [vmem:[%s1245_s11 + $0x148] sm:$0xff]  ;;  %v250_v26 = vld [vmem:[%s1245_s11 + $0x150] sm:$0xff] }
  0x20   : > { %215 = vst [vmem:[%s1250_s12 + $0x40] sm:$0xff] %v214_v8  ;;  %v252_v27 = vld [vmem:[%s1245_s11 + $0x158] sm:$0xff]  ;;  %v254_v28 = vld [vmem:[%s1245_s11 + $0x160] sm:$0xff]  ;;  %v256_v29 = vld [vmem:[%s1245_s11 + $0x168] sm:$0xff] }
  0x21   : > { %217 = vst [vmem:[%s1250_s12 + $0x48] sm:$0xff] %v216_v9  ;;  %v258_v30 = vld [vmem:[%s1245_s11 + $0x170] sm:$0xff]  ;;  %v260_v31 = vld [vmem:[%s1245_s11 + $0x178] sm:$0xff] }
  0x22   : > { %219 = vst [vmem:[%s1250_s12 + $0x50] sm:$0xff] %v218_v10 }
  0x23   : > { %221 = vst [vmem:[%s1250_s12 + $0x58] sm:$0xff] %v220_v11 }
  0x24   : > { %223 = vst [vmem:[%s1250_s12 + $0x60] sm:$0xff] %v222_v12 }
  0x25   : > { %225 = vst [vmem:[%s1250_s12 + $0x68] sm:$0xff] %v224_v13 }
  0x26   : > { %227 = vst [vmem:[%s1250_s12 + $0x70] sm:$0xff] %v226_v14 }
  0x27   : > { %229 = vst [vmem:[%s1250_s12 + $0x78] sm:$0xff] %v228_v15 }
  0x28   : > { %231 = vst [vmem:[%s1250_s12 + $0x80] sm:$0xff] %v230_v16 }
  0x29   : > { %233 = vst [vmem:[%s1250_s12 + $0x88] sm:$0xff] %v232_v17 }
  0x2a   : > { %235 = vst [vmem:[%s1250_s12 + $0x90] sm:$0xff] %v234_v18 }
  0x2b   : > { %237 = vst [vmem:[%s1250_s12 + $0x98] sm:$0xff] %v236_v19 }
  0x2c   : > { %239 = vst [vmem:[%s1250_s12 + $0xa0] sm:$0xff] %v238_v20 }
  0x2d   : > { %241 = vst [vmem:[%s1250_s12 + $0xa8] sm:$0xff] %v240_v21 }
  0x2e   : > { %243 = vst [vmem:[%s1250_s12 + $0xb0] sm:$0xff] %v242_v22 }
  0x2f   : > { %245 = vst [vmem:[%s1250_s12 + $0xb8] sm:$0xff] %v244_v23 }
  0x30   : > { %247 = vst [vmem:[%s1250_s12 + $0xc0] sm:$0xff] %v246_v24 }
  0x31   : > { %249 = vst [vmem:[%s1250_s12 + $0xc8] sm:$0xff] %v248_v25 }
  0x32   : > { %251 = vst [vmem:[%s1250_s12 + $0xd0] sm:$0xff] %v250_v26 }
  0x33   : > { %253 = vst [vmem:[%s1250_s12 + $0xd8] sm:$0xff] %v252_v27 }
  0x34   : > { %255 = vst [vmem:[%s1250_s12 + $0xe0] sm:$0xff] %v254_v28 }
  0x35   : > { %257 = vst [vmem:[%s1250_s12 + $0xe8] sm:$0xff] %v256_v29 }
  0x36   : > { %259 = vst [vmem:[%s1250_s12 + $0xf0] sm:$0xff] %v258_v30 }
  0x37   : > { %261 = vst [vmem:[%s1250_s12 + $0xf8] sm:$0xff] %v260_v31 }
  0x38 PF: > { %p995_p7 = scmp.ge.s32.totalorder %s1155_s21, 1  ;;  %p280_p8 = scmp.lt.s32.totalorder %s1155_s21, 5 }
  0x3a   : > { %p281_p9 = pnand %p995_p7, %p280_p8 }
  0x3b   : > { %s287_s13 = sand.u32 (!%p281_p9), 1, %s1131_s15   ;;  %p322_p10 = scmp.lt.s32.totalorder (!%p281_p9), %s1143_s18, 1 }
  0x3c   : > { %284 = sbr.rel (%p281_p9) target bundleno = 594 (0x252), region = 51  ;;  %s996_s14 = sshll.u32 (!%p281_p9), %s287_s13, 8 }
  0x3d   : > { %s1337_s11 = scalar_lea.vmem (!%p281_p9), [#allocation3], %s996_s14  ;;  %p999_p11 = scmp.ne.s32.totalorder (!%p281_p9), %s1139_s17, 0 }
  0x41   : > { %s1498_s18 = smov (!%p322_p10, %s1143_s18), 1  ;;  %339 = sbr.rel (%p999_p11) target bundleno = 73 (0x49), region = 59 }
  0x42   : > { %s997_s24 = sshll.u32 %s1498_s18, 3  ;;  %s332_s27 = scalar_lea.vmem %s1483_s3, %s1498_s18 }
  0x43   : > { %s325_s5 = scalar_lea.vmem %s1481_s1, %s997_s24  ;;  %s1331_s15 = scalar_lea.vmem %s1482_s2, %s997_s24 }
  0x44   : > { %s335_s10 = scalar_lea.vmem %s1484_s4, %s1498_s18 }
  0x46   : > { %vm340_vm0 = vcmask 64512   ;;  %v1157_v32 = vmov 0.0  }
  0x47   : > { %341 = vst.msk [vmem:[#allocation2] sm:$0xff] %vm340_vm0, %v1157_v32 }
  0x48   : > { %342 = vst.msk [vmem:[#allocation2 + $0x8] sm:$0xff] %vm340_vm0, %v1157_v32 }
  0x49 PF: > { %v375_v33 = vld [vmem:[%s325_s5] sm:$0xff]  ;;  %v1158_v34 = vmov 0   ;;  %v376_v35 = vlaneseq  ;;  %s1000_s12 = sshll.u32 %s1139_s17, 11  ;;  %v1159_v58 = vmov 1.0   ;;  %v343_v59 = vld [vmem:[%s1337_s11] sm:$0xff]  ;;  %v344_v60 = vld [vmem:[%s1337_s11 + $0x8] sm:$0xff] }
  0x4a   : > { %1100 = vset.pattern.permute.xlu0 %v1158_v34  ;;  %v1346_v40 = vstv %s1000_s12  ;;  %v345_v63 = vld [vmem:[%s1337_s11 + $0x10] sm:$0xff]  ;;  %v346_v0 = vld [vmem:[%s1337_s11 + $0x18] sm:$0xff]  ;;  %v359_v3 = vld [vmem:[%s1337_s11 + $0x80] sm:$0xff]  ;;  %p1033_p12 = scmp.ne.s32.totalorder %s1139_s17, 1 }
  0x4b   : > { %412 = vperm.xlu0 %1100, %v375_v33   ;;  %v1340_v36 = vand.u32 127, %v376_v35  ;;  %v360_v4 = vld [vmem:[%s1337_s11 + $0x88] sm:$0xff]  ;;  %v361_v5 = vld [vmem:[%s1337_s11 + $0x90] sm:$0xff]  ;;  %v362_v6 = vld [vmem:[%s1337_s11 + $0x98] sm:$0xff] }
  0x4c   : > { %v347_v11 = vld [vmem:[%s1337_s11 + $0x20] sm:$0xff]  ;;  %v348_v12 = vld [vmem:[%s1337_s11 + $0x28] sm:$0xff]  ;;  %v349_v15 = vld [vmem:[%s1337_s11 + $0x30] sm:$0xff] }
  0x4d   : > { %v378_v37 = vadd.s32 128, %v1340_v36  ;;  %v379_v38 = vadd.s32 256, %v1340_v36  ;;  %v380_v39 = vadd.s32 384, %v1340_v36  ;;  %v381_v41 = vadd.s32 512, %v1340_v36  ;;  %v350_v16 = vld [vmem:[%s1337_s11 + $0x38] sm:$0xff]  ;;  %v363_v19 = vld [vmem:[%s1337_s11 + $0xa0] sm:$0xff] }
  0x4e   : > { %v382_v42 = vadd.s32 640, %v1340_v36  ;;  %v383_v43 = vadd.s32 768, %v1340_v36  ;;  %v384_v44 = vadd.s32 896, %v1340_v36  ;;  %v395_v45 = vadd.s32 %v1346_v40, %v1340_v36  ;;  %v364_v20 = vld [vmem:[%s1337_s11 + $0xa8] sm:$0xff]  ;;  %v365_v21 = vld [vmem:[%s1337_s11 + $0xb0] sm:$0xff]  ;;  %v366_v22 = vld [vmem:[%s1337_s11 + $0xb8] sm:$0xff] }
  0x4f   : > { %v396_v46 = vadd.s32 %v1346_v40, %v378_v37  ;;  %v397_v47 = vadd.s32 %v1346_v40, %v379_v38  ;;  %v398_v48 = vadd.s32 %v1346_v40, %v380_v39  ;;  %v399_v49 = vadd.s32 %v1346_v40, %v381_v41  ;;  %v351_v23 = vld [vmem:[%s1337_s11 + $0x40] sm:$0xff]  ;;  %v352_v24 = vld [vmem:[%s1337_s11 + $0x48] sm:$0xff]  ;;  %v353_v25 = vld [vmem:[%s1337_s11 + $0x50] sm:$0xff] }
  0x50   : > { %v400_v50 = vadd.s32 %v1346_v40, %v382_v42  ;;  %v401_v51 = vadd.s32 %v1346_v40, %v383_v43  ;;  %v402_v52 = vadd.s32 %v1346_v40, %v384_v44  ;;  %v385_v53 = vadd.s32 1024, %v1340_v36  ;;  %v354_v26 = vld [vmem:[%s1337_s11 + $0x58] sm:$0xff]  ;;  %v367_v27 = vld [vmem:[%s1337_s11 + $0xc0] sm:$0xff]  ;;  %v368_v28 = vld [vmem:[%s1337_s11 + $0xc8] sm:$0xff] }
  0x51   : > { %v386_v54 = vadd.s32 1152, %v1340_v36  ;;  %v387_v56 = vadd.s32 1280, %v1340_v36  ;;  %v388_v57 = vadd.s32 1408, %v1340_v36  ;;  %v389_v7 = vadd.s32 1536, %v1340_v36  ;;  %v369_v29 = vld [vmem:[%s1337_s11 + $0xd0] sm:$0xff]  ;;  %v370_v30 = vld [vmem:[%s1337_s11 + $0xd8] sm:$0xff] }
  0x52   : > { %v403_v61 = vadd.s32 %v1346_v40, %v385_v53  ;;  %v390_v8 = vadd.s32 1664, %v1340_v36  ;;  %v391_v9 = vadd.s32 1792, %v1340_v36  ;;  %v392_v10 = vadd.s32 1920, %v1340_v36  ;;  %v355_v31 = vld [vmem:[%s1337_s11 + $0x60] sm:$0xff]  ;;  %v356_v32 = vld [vmem:[%s1337_s11 + $0x68] sm:$0xff]  ;;  %v357_v33 = vld [vmem:[%s1337_s11 + $0x70] sm:$0xff] }
  0x53   : > { %v404_v62 = vadd.s32 %v1346_v40, %v386_v54  ;;  %v405_v1 = vadd.s32 %v1346_v40, %v387_v56  ;;  %v406_v2 = vadd.s32 %v1346_v40, %v388_v57  ;;  %v407_v13 = vadd.s32 %v1346_v40, %v389_v7  ;;  %v358_v34 = vld [vmem:[%s1337_s11 + $0x78] sm:$0xff]  ;;  %v371_v35 = vld [vmem:[%s1337_s11 + $0xe0] sm:$0xff]  ;;  %v372_v36 = vld [vmem:[%s1337_s11 + $0xe8] sm:$0xff] }
  0x54   : > { %v408_v14 = vadd.s32 %v1346_v40, %v390_v8  ;;  %v409_v17 = vadd.s32 %v1346_v40, %v391_v9  ;;  %v410_v18 = vadd.s32 %v1346_v40, %v392_v10  ;;  %v373_v37 = vld [vmem:[%s1337_s11 + $0xf0] sm:$0xff]  ;;  %v374_v38 = vld [vmem:[%s1337_s11 + $0xf8] sm:$0xff] }
  0xbd   : > { %v1363_v55 = vpop.permute.xlu0 %412 }
  0xbe   : > { %vm414_vm1 = vcmp.eq.s32.totalorder %v395_v45, %v1363_v55  ;;  %vm415_vm2 = vcmp.eq.s32.totalorder %v396_v46, %v1363_v55  ;;  %vm416_vm3 = vcmp.eq.s32.totalorder %v397_v47, %v1363_v55  ;;  %vm417_vm4 = vcmp.eq.s32.totalorder %v398_v48, %v1363_v55 }
  0xbf   : > { %1017 = vmatpush.xpose.msk.msra.mxu0 %vm414_vm1, %v1159_v58  ;;  %1018 = vmatpush.xpose.msk.msra.mxu1 %vm415_vm2, %v1159_v58  ;;  %vm418_vm5 = vcmp.eq.s32.totalorder %v399_v49, %v1363_v55  ;;  %vm419_vm6 = vcmp.eq.s32.totalorder %v400_v50, %v1363_v55  ;;  %vm420_vm7 = vcmp.eq.s32.totalorder %v401_v51, %v1363_v55  ;;  %vm834_vm1 = vcmask 64512  }
  0xc0   : > { %1019 = vmatpush.xpose.msk.msra.mxu2 %vm416_vm3, %v1159_v58  ;;  %1020 = vmatpush.xpose.msk.msra.mxu3 %vm417_vm4, %v1159_v58  ;;  %vm421_vm8 = vcmp.eq.s32.totalorder %v402_v52, %v1363_v55  ;;  %vm422_vm9 = vcmp.eq.s32.totalorder %v403_v61, %v1363_v55  ;;  %vm423_vm10 = vcmp.eq.s32.totalorder %v404_v62, %v1363_v55 }
  0xc1   : > { %vm424_vm11 = vcmp.eq.s32.totalorder %v405_v1, %v1363_v55  ;;  %vm425_vm12 = vcmp.eq.s32.totalorder %v406_v2, %v1363_v55  ;;  %vm426_vm13 = vcmp.eq.s32.totalorder %v407_v13, %v1363_v55  ;;  %vm427_vm14 = vcmp.eq.s32.totalorder %v408_v14, %v1363_v55 }
  0xc2   : > { %480 = vmatmul.f32.vlgmr.msra.gmra.mxu0 %v343_v59  ;;  %503 = vmatmul.f32.vlgmr.msra.gmra.mxu1 %v344_v60  ;;  %vm428_vm15 = vcmp.eq.s32.totalorder %v409_v17, %v1363_v55  ;;  %vm429_vm0 = vcmp.eq.s32.totalorder %v410_v18, %v1363_v55 }
  0xc3   : > { %1021 = vmatpush.xpose.msk.msrb.mxu0 %vm418_vm5, %v1159_v58  ;;  %1022 = vmatpush.xpose.msk.msrb.mxu1 %vm419_vm6, %v1159_v58 }
  0xc4   : > { %1023 = vmatpush.xpose.msk.msrb.mxu2 %vm420_vm7, %v1159_v58  ;;  %1024 = vmatpush.xpose.msk.msrb.mxu3 %vm421_vm8, %v1159_v58 }
  0xc5   : > { %526 = vmatmul.f32.vlgmr.msra.gmra.mxu2 %v345_v63  ;;  %549 = vmatmul.f32.vlgmr.msra.gmra.mxu3 %v346_v0 }
  0xc7   : > { %1025 = vmatpush.xpose.msk.msra.mxu0 %vm422_vm9, %v1159_v58  ;;  %1026 = vmatpush.xpose.msk.msra.mxu1 %vm423_vm10, %v1159_v58 }
  0xc8   : > { %1027 = vmatpush.xpose.msk.msra.mxu2 %vm424_vm11, %v1159_v58  ;;  %1028 = vmatpush.xpose.msk.msra.mxu3 %vm425_vm12, %v1159_v58 }
  0xca   : > { %483 = vmatmul.f32.gmra.mxu0 %v359_v3  ;;  %506 = vmatmul.f32.gmra.mxu1 %v360_v4 }
  0xcd   : > { %529 = vmatmul.f32.gmra.mxu2 %v361_v5  ;;  %552 = vmatmul.f32.gmra.mxu3 %v362_v6 }
  0xd2   : > { %572 = vmatmul.f32.vlgmr.msrb.gmra.mxu0 %v347_v11  ;;  %595 = vmatmul.f32.vlgmr.msrb.gmra.mxu1 %v348_v12 }
  0xd3   : > { %1029 = vmatpush.xpose.msk.msrb.mxu0 %vm426_vm13, %v1159_v58  ;;  %1030 = vmatpush.xpose.msk.msrb.mxu1 %vm427_vm14, %v1159_v58 }
  0xd5   : > { %618 = vmatmul.f32.vlgmr.msrb.gmra.mxu2 %v349_v15  ;;  %641 = vmatmul.f32.vlgmr.msrb.gmra.mxu3 %v350_v16 }
  0xd6   : > { %1031 = vmatpush.xpose.msk.msrb.mxu2 %vm428_vm15, %v1159_v58  ;;  %1032 = vmatpush.xpose.msk.msrb.mxu3 %vm429_vm0, %v1159_v58 }
  0xda   : > { %575 = vmatmul.f32.gmra.mxu0 %v363_v19  ;;  %598 = vmatmul.f32.gmra.mxu1 %v364_v20 }
  0xdd   : > { %621 = vmatmul.f32.gmra.mxu2 %v365_v21  ;;  %644 = vmatmul.f32.gmra.mxu3 %v366_v22 }
  0xe2   : > { %664 = vmatmul.f32.vlgmr.msra.gmra.mxu0 %v351_v23  ;;  %687 = vmatmul.f32.vlgmr.msra.gmra.mxu1 %v352_v24 }
  0xe5   : > { %710 = vmatmul.f32.vlgmr.msra.gmra.mxu2 %v353_v25  ;;  %733 = vmatmul.f32.vlgmr.msra.gmra.mxu3 %v354_v26 }
  0xea   : > { %667 = vmatmul.f32.gmra.mxu0 %v367_v27  ;;  %690 = vmatmul.f32.gmra.mxu1 %v368_v28 }
  0xed   : > { %713 = vmatmul.f32.gmra.mxu2 %v369_v29  ;;  %736 = vmatmul.f32.gmra.mxu3 %v370_v30  ;;  %v462_v29 = vld [vmem:[#allocation2] sm:$0xff] }
  0xf2   : > { %756 = vmatmul.f32.vlgmr.msrb.gmra.mxu0 %v355_v31  ;;  %779 = vmatmul.f32.vlgmr.msrb.gmra.mxu1 %v356_v32 }
  0xf5   : > { %802 = vmatmul.f32.vlgmr.msrb.gmra.mxu2 %v357_v33  ;;  %825 = vmatmul.f32.vlgmr.msrb.gmra.mxu3 %v358_v34 }
  0xfa   : > { %759 = vmatmul.f32.gmra.mxu0 %v371_v35  ;;  %782 = vmatmul.f32.gmra.mxu1 %v372_v36 }
  0xfd   : > { %805 = vmatmul.f32.gmra.mxu2 %v373_v37  ;;  %828 = vmatmul.f32.gmra.mxu3 %v374_v38  ;;  %v463_v38 = vld [vmem:[#allocation2 + $0x8] sm:$0xff] }
 0x13f   : > { %v481_v39 = vpop.f32.mrf.mxu0  ;;  %v504_v40 = vpop.f32.mrf.mxu1 }
 0x140   : > { %v505_v49 = vadd.f32 %v504_v40, %v481_v39 }
 0x147   : > { %v484_v43 = vpop.f32.mrf.mxu0  ;;  %v507_v44 = vpop.f32.mrf.mxu1 }
 0x148   : > { %v527_v41 = vpop.f32.mrf.mxu2  ;;  %v550_v42 = vpop.f32.mrf.mxu3  ;;  %v508_v56 = vadd.f32 %v507_v44, %v484_v43 }
 0x149   : > { %v528_v50 = vadd.f32 %v527_v41, %v505_v49 }
 0x14b   : > { %v551_v53 = vadd.f32 %v550_v42, %v528_v50 }
 0x14f   : > { %v573_v47 = vpop.f32.mrf.mxu0  ;;  %v596_v48 = vpop.f32.mrf.mxu1 }
 0x150   : > { %v530_v45 = vpop.f32.mrf.mxu2  ;;  %v553_v46 = vpop.f32.mrf.mxu3  ;;  %v574_v57 = vadd.f32 %v573_v47, %v551_v53 }
 0x151   : > { %v531_v58 = vadd.f32 %v530_v45, %v508_v56 }
 0x152   : > { %v597_v59 = vadd.f32 %v596_v48, %v574_v57 }
 0x153   : > { %v554_v62 = vadd.f32 %v553_v46, %v531_v58 }
 0x157   : > { %v576_v54 = vpop.f32.mrf.mxu0  ;;  %v599_v55 = vpop.f32.mrf.mxu1 }
 0x158   : > { %v619_v51 = vpop.f32.mrf.mxu2  ;;  %v642_v52 = vpop.f32.mrf.mxu3  ;;  %v577_v2 = vadd.f32 %v576_v54, %v554_v62 }
 0x159   : > { %v620_v63 = vadd.f32 %v619_v51, %v597_v59 }
 0x15a   : > { %v600_v4 = vadd.f32 %v599_v55, %v577_v2 }
 0x15b   : > { %v643_v3 = vadd.f32 %v642_v52, %v620_v63 }
 0x15f   : > { %v665_v0 = vpop.f32.mrf.mxu0  ;;  %v688_v1 = vpop.f32.mrf.mxu1 }
 0x160   : > { %v622_v60 = vpop.f32.mrf.mxu2  ;;  %v645_v61 = vpop.f32.mrf.mxu3  ;;  %v666_v5 = vadd.f32 %v665_v0, %v643_v3 }
 0x161   : > { %v623_v8 = vadd.f32 %v622_v60, %v600_v4 }
 0x162   : > { %v689_v11 = vadd.f32 %v688_v1, %v666_v5 }
 0x163   : > { %v646_v12 = vadd.f32 %v645_v61, %v623_v8 }
 0x167   : > { %v668_v9 = vpop.f32.mrf.mxu0  ;;  %v691_v10 = vpop.f32.mrf.mxu1 }
 0x168   : > { %v711_v6 = vpop.f32.mrf.mxu2  ;;  %v734_v7 = vpop.f32.mrf.mxu3  ;;  %v669_v14 = vadd.f32 %v668_v9, %v646_v12 }
 0x169   : > { %v712_v13 = vadd.f32 %v711_v6, %v689_v11 }
 0x16a   : > { %v692_v20 = vadd.f32 %v691_v10, %v669_v14 }
 0x16b   : > { %v735_v17 = vadd.f32 %v734_v7, %v712_v13 }
 0x16f   : > { %v757_v18 = vpop.f32.mrf.mxu0  ;;  %v780_v19 = vpop.f32.mrf.mxu1 }
 0x170   : > { %v714_v15 = vpop.f32.mrf.mxu2  ;;  %v737_v16 = vpop.f32.mrf.mxu3  ;;  %v758_v21 = vadd.f32 %v757_v18, %v735_v17 }
 0x171   : > { %v715_v22 = vadd.f32 %v714_v15, %v692_v20 }
 0x172   : > { %v781_v23 = vadd.f32 %v780_v19, %v758_v21 }
 0x173   : > { %v738_v26 = vadd.f32 %v737_v16, %v715_v22 }
 0x177   : > { %v760_v28 = vpop.f32.mrf.mxu0  ;;  %v783_v32 = vpop.f32.mrf.mxu1 }
 0x178   : > { %v803_v24 = vpop.f32.mrf.mxu2  ;;  %v826_v25 = vpop.f32.mrf.mxu3  ;;  %v761_v30 = vadd.f32 %v760_v28, %v738_v26 }
 0x179   : > { %v804_v27 = vadd.f32 %v803_v24, %v781_v23 }
 0x17a   : > { %v784_v34 = vadd.f32 %v783_v32, %v761_v30 }
 0x17b   : > { %v827_v31 = vadd.f32 %v826_v25, %v804_v27 }
 0x17d   : > { %v832_v33 = vadd.f32 %v827_v31, %v462_v29 }
 0x17f   : > { %835 = vst.msk [vmem:[#allocation2] sm:$0xff] %vm834_vm1, %v832_v33 }
 0x180   : > { %v806_v35 = vpop.f32.mrf.mxu2  ;;  %v829_v36 = vpop.f32.mrf.mxu3 }
 0x181   : > { %v807_v37 = vadd.f32 %v806_v35, %v784_v34 }
 0x183   : > { %v830_v39 = vadd.f32 %v829_v36, %v807_v37  ;;  %840 = sbr.rel (%p1033_p12) target bundleno = 594 (0x252), region = 63 }
 0x185   : > { %v833_v40 = vadd.f32 %v830_v39, %v463_v38 }
 0x187   : > { %836 = vst.msk [vmem:[#allocation2 + $0x8] sm:$0xff] %vm834_vm1, %v833_v40 }
 0x188   : > { %v841_v41 = vld [vmem:[#allocation2] sm:$0xff]  ;;  %vm858_vm2 = vcmask 0  }
 0x189   : > { %v843_v44 = vld [vmem:[%s1331_s15] sm:$0xff] }
 0x18a   : > { %v860_v48 = vsel %vm834_vm1, %v843_v44, 0.0 }
 0x18e   : > { %v842_v42 = vld [vmem:[#allocation2 + $0x8] sm:$0xff] }
 0x18f   : > { %v844_v43 = vsub.f32 %v842_v42, %v841_v41 }
 0x191   : > { %v845_v45 = vand.u32 2147483647, %v844_v43 }
 0x193   : > { %v846_v46 = vmul.f32 %v845_v45, %v843_v44 }
 0x195   : > { %v847_v47 = vsel %vm834_vm1, %v846_v46, 0.0 }
 0x196   : > { %848 = vadd.xlane.f32.xlu0 %v847_v47 }
 0x19e   : > { %861 = vadd.xlane.f32.xlu0 %v860_v48 }
 0x209   : > { %v849_v49 = vpop.xlane.xlu0 %848 }
 0x20a   : > { %v850_v50 = vrot.slane %v849_v49, 4 }
 0x20c   : > { %v851_v51 = vadd.f32 %v850_v50, %v849_v49 }
 0x20e   : > { %v852_v52 = vrot.slane %v851_v51, 2 }
 0x210   : > { %v853_v53 = vadd.f32 %v852_v52, %v851_v51 }
 0x211   : > { %v862_v54 = vpop.xlane.xlu0 %861 }
 0x212   : > { %v863_v55 = vrot.slane %v862_v54, 4  ;;  %v854_v56 = vrot.slane %v853_v53, 1 }
 0x214   : > { %v864_v57 = vadd.f32 %v863_v55, %v862_v54  ;;  %v855_v58 = vadd.f32 %v854_v56, %v853_v53 }
 0x216   : > { %v865_v59 = vrot.slane %v864_v57, 2  ;;  %1037 = vpush %v855_v58 }
 0x218   : > { %v866_v60 = vadd.f32 %v865_v59, %v864_v57 }
 0x21a   : > { %v867_v61 = vrot.slane %v866_v60, 1 }
 0x21c   : > { %v868_v62 = vadd.f32 %v867_v61, %v866_v60 }
 0x21e   : > { %1039 = vpush %v868_v62 }
 0x247   : > { %s1038_s17 = spop %1037 }
 0x248   : > { %v857_v63 = vstv %s1038_s17 }
 0x249   : > { %859 = vst.msk [vmem:[%s332_s27] sm:$0x1] %vm858_vm2, %v857_v63 }
 0x24f   : > { %s1040_s24 = spop %1039 }
 0x250   : > { %v870_v0 = vstv %s1040_s24 }
 0x251   : > { %871 = vst.msk [vmem:[%s335_s10] sm:$0x1] %vm858_vm2, %v870_v0 }
 0x252 PF: > { %s15_s21 = sadd.s32 1, %s1155_s21   ;;  %s1485_s15 = smov %s1135_s16 }
 0x253   : > { %p12_p13 = scmp.ge.s32.totalorder %s15_s21, 6   ;;  %s1486_s16 = smov %s1236_s28 }
 0x254   : > { %s1487_s17 = smov %s1147_s19  ;;  %s1488_s18 = smov %s1151_s20 }
 0x255   : > { %s1489_s19 = smov %s1492_s22  ;;  %s1490_s20 = smov %s1496_s23 }
 0x256   :  { %14 = sbr.rel (!%p12_p13) target bundleno = 4 (0x4), region = 116 }

</bundles_post_ra>
